<compile_context>
chip_gen: v6e
topology: v6e:2x2x1
jax: 0.10.0
libtpu: 0.0.40
codegen_flags: <defaults>
</compile_context>

<pallas_src>
import functools

import jax
import jax.numpy as jnp
import numpy as np
from jax.experimental import pallas as pl
from jax.experimental.pallas import tpu as pltpu

BN_EPS = 1e-5


def _round_up(v, m):
  return ((v + m - 1) // m) * m


def _bottleneck_kernel(x_ref, w1d_ref, b1d_ref, w2_ref, b2_ref, w3_ref, b3_ref,
                       m_ref, o_ref):
  """One lane tile: x_ref (C_in, TL) bf16 -> o_ref (4*planes, TL) bf16."""
  pr = w2_ref.shape[1]          # padded `planes` rows inside the fused matmul
  x = x_ref[...]                # bf16 (C_in, TL)
  m = m_ref[...]                # bf16 (2, TL) validity masks

  # Fused conv1 + downsample (+ folded BN): one MXU pass over x per tile.
  h = jnp.dot(w1d_ref[...], x, preferred_element_type=jnp.float32) + b1d_ref[...]
  res = h[pr:, :]                                               # f32 (p4, TL)
  # conv1 + relu, masked to conv1's valid output positions (mask in bf16).
  h1 = jnp.maximum(h[:pr, :], 0.0).astype(jnp.bfloat16) * m[0:1, :]

  # conv2 (+ folded bn2) + relu, masked to conv2's valid output positions.
  h2 = jnp.dot(w2_ref[...], h1, preferred_element_type=jnp.float32) + b2_ref[...]
  h2 = jnp.maximum(h2, 0.0).astype(jnp.bfloat16) * m[1:2, :]

  # conv3 (+ folded bn3) + residual add + final relu; store in output dtype.
  out = jnp.dot(w3_ref[...], h2, preferred_element_type=jnp.float32) + b3_ref[...]
  o_ref[...] = jnp.maximum(out + res, 0.0).astype(o_ref.dtype)


@functools.partial(jax.jit, static_argnames=("lane_tile", "out_dtype"))
def bottleneck_pallas(x_ncl, kernel_params, *, lane_tile=512,
                      out_dtype=jnp.bfloat16):
  """x_ncl: (N, C_in, L) float32 (PyTorch NCL). Returns (N, 4*planes, L+6)."""
  w1, b1, w2, b2, w3, b3, wd, bd = kernel_params
  N, c_in, L = x_ncl.shape
  planes = w1.shape[0]
  p4 = w3.shape[0]

  # kernel_size=1, padding=1 convs each grow the time axis by 2 -> final L+6.
  Lp = L + 6
  NLp = N * Lp

  # Lane-tile selection: keep TL large (default 512) and pad the fused lane
  # axis up to a multiple of TL.  When the problem has >= 256 lanes, cap TL so
  # the "parallel" grid has at least 2 steps (both v7x TensorCores get work).
  TL = max(128, (lane_tile // 128) * 128)
  lanes_min = _round_up(NLp, 128)
  if lanes_min >= 256:
    TL = min(TL, max(128, (lanes_min // 2) // 128 * 128))
  Lf = _round_up(lanes_min, TL)

  # bf16 FIRST, then the layout plumbing (pad -> transpose -> reshape -> pad),
  # so the un-hidden wrapper HBM passes move half the bytes.
  xb = x_ncl.astype(jnp.bfloat16)
  xp = jnp.pad(xb, ((0, 0), (0, 0), (3, 3)))                   # (N, C_in, Lp)
  xf = jnp.transpose(xp, (1, 0, 2)).reshape(c_in, NLp)         # (C_in, N*Lp)
  xf = jnp.pad(xf, ((0, 0), (0, Lf - NLp)))                    # lane-dense pad

  # Validity masks replace the intermediate zero-padding: within each length-Lp
  # slot, conv1's output occupies positions [2, L+4) and conv2's occupies
  # [1, L+5); everything else (incl. the lane-pad tail) must read as zero.
  t = np.arange(Lf)
  tl = t % Lp
  inb = t < NLp
  m1 = (tl >= 2) & (tl < L + 4) & inb
  m2 = (tl >= 1) & (tl < L + 5) & inb
  masks = jnp.asarray(np.stack([m1, m2]).astype(np.float32),
                      dtype=jnp.bfloat16)                      # (2, Lf)

  # Fold conv1 + downsample into a single matmul: pad conv1's rows to a
  # sublane-aligned count `pr`, then stack [w1_pad ; wd] / [b1_pad ; bd].
  pr = _round_up(planes, 8)
  w1p = jnp.pad(w1, ((0, pr - planes), (0, 0)))
  b1p = jnp.pad(b1, (0, pr - planes))
  w1d = jnp.concatenate([w1p, wd], axis=0).astype(jnp.bfloat16)  # (pr+p4, C_in)
  b1d = jnp.concatenate([b1p, bd], axis=0).reshape(-1, 1).astype(jnp.float32)
  w2p = jnp.pad(w2, ((0, 0), (0, pr - planes))).astype(jnp.bfloat16)  # (planes, pr)
  w3b = w3.astype(jnp.bfloat16)
  b2c = b2.reshape(-1, 1).astype(jnp.float32)
  b3c = b3.reshape(-1, 1).astype(jnp.float32)

  tile = lambda i: (0, i)     # tiled along the fused lane axis
  full = lambda i: (0, 0)     # broadcast to every grid step

  out_f = pl.pallas_call(
      _bottleneck_kernel,
      out_shape=jax.ShapeDtypeStruct((p4, Lf), out_dtype),
      grid=(Lf // TL,),
      in_specs=[
          pl.BlockSpec((c_in, TL), tile),        # x (fused batch*time)
          pl.BlockSpec((pr + p4, c_in), full),   # fused conv1+downsample weight
          pl.BlockSpec((pr + p4, 1), full),      # fused conv1+downsample bias
          pl.BlockSpec((planes, pr), full),      # w2 (bn2 folded, padded cols)
          pl.BlockSpec((planes, 1), full),       # b2
          pl.BlockSpec((p4, planes), full),      # w3 (bn3 folded)
          pl.BlockSpec((p4, 1), full),           # b3
          pl.BlockSpec((2, TL), tile),           # merged validity masks (bf16)
      ],
      out_specs=pl.BlockSpec((p4, TL), tile),
      compiler_params=pltpu.CompilerParams(
          dimension_semantics=("parallel",),
          vmem_limit_bytes=64 * 1024 * 1024),
  )(xf, w1d, b1d, w2p, b2c, w3b, b3c, masks)

  # Un-fuse the batch, drop the lane padding, back to PyTorch NCL layout.
  out = out_f[:, :NLp].reshape(p4, N, Lp)
  return jnp.transpose(out, (1, 0, 2))           # (N, 4*planes, L+6), bf16


# ----------------------------- parameter setup ------------------------------

def make_params(key, inplanes, planes):
  """Synthetic conv weights + eval-mode BatchNorm1d stats, plus the BN-folded
  effective (weight, bias) pairs the kernel consumes."""
  p4 = planes * 4
  ks = jax.random.split(key, 8)

  def conv_w(k, c_out, c_in):
    return jax.random.normal(k, (c_out, c_in), jnp.float32) / np.sqrt(c_in)

  def bn_p(k, c):
    k1, k2, k3, k4 = jax.random.split(k, 4)
    gamma = 1.0 + 0.1 * jax.random.normal(k1, (c,), jnp.float32)
    beta = 0.1 * jax.random.normal(k2, (c,), jnp.float32)
    mean = 0.1 * jax.random.normal(k3, (c,), jnp.float32)
    var = 0.9 + 0.2 * jax.random.uniform(k4, (c,), jnp.float32)
    return gamma, beta, mean, var

  w1, bn1 = conv_w(ks[0], planes, inplanes), bn_p(ks[1], planes)
  w2, bn2 = conv_w(ks[2], planes, planes), bn_p(ks[3], planes)
  w3, bn3 = conv_w(ks[4], p4, planes), bn_p(ks[5], p4)
  wd, bnd = conv_w(ks[6], p4, inplanes), bn_p(ks[7], p4)

  def fold(w, bn):
    gamma, beta, mean, var = bn
    s = gamma / jnp.sqrt(var + BN_EPS)
    return s[:, None] * w, beta - s * mean       # (C_out, C_in), (C_out,)

  kernel_params = (*fold(w1, bn1), *fold(w2, bn2),
                   *fold(w3, bn3), *fold(wd, bnd))
  ref_params = (w1, bn1, w2, bn2, w3, bn3, wd, bnd)
  return kernel_params, ref_params


# ------------------------------ pure-JAX reference ---------------------------

def bottleneck_ref(x, ref_params):
  """Literal (unfused, f32) eval-mode forward of the PyTorch module."""
  w1, bn1, w2, bn2, w3, bn3, wd, bnd = ref_params

  def conv1x1(x, w, pad):
    return jax.lax.conv_general_dilated(
        x, w[:, :, None], window_strides=(1,), padding=[(pad, pad)],
        dimension_numbers=("NCH", "OIH", "NCH"))

  def bn(x, p):
    gamma, beta, mean, var = p
    s = gamma / jnp.sqrt(var + BN_EPS)
    return s[None, :, None] * (x - mean[None, :, None]) + beta[None, :, None]

  out = jnp.maximum(bn(conv1x1(x, w1, 1), bn1), 0.0)
  out = jnp.maximum(bn(conv1x1(out, w2, 1), bn2), 0.0)
  out = bn(conv1x1(out, w3, 1), bn3)
  res = bn(conv1x1(x, wd, 3), bnd)                 # downsample branch
  return jnp.maximum(out + res, 0.0)


# ------------------------------------ main -----------------------------------

if __name__ == "__main__":
  # TODO(synk): stride != 1 and training-mode BatchNorm (batch statistics) are
  # not implemented; this kernel is the eval-mode, stride=1 forward pass.
  N, INPLANES, PLANES, L = 2, 16, 8, 64   # L=64 -> fused lanes 256 -> grid=(2,)

  key = jax.random.PRNGKey(0)
  kx, kp = jax.random.split(key)
  x = jax.random.normal(kx, (N, INPLANES, L), jnp.float32)     # NCL, like torch

  kernel_params, ref_params = make_params(kp, INPLANES, PLANES)

  out = jax.block_until_ready(bottleneck_pallas(x, kernel_params))
  ref = bottleneck_ref(x, ref_params)

  assert out.shape == (N, PLANES * 4, L + 6), out.shape
  assert out.dtype == jnp.bfloat16, out.dtype
  # bf16 MXU operands / bf16 output vs the f32 reference -> a few % tolerance.
  np.testing.assert_allclose(np.asarray(out, dtype=np.float32),
                             np.asarray(ref),
                             rtol=4e-2, atol=4e-2)
  print("KERNEL_OK")
</pallas_src>

<mosaic_0001>
module attributes {stable_mosaic.version = 11 : i64} {
  func.func @_bottleneck_kernel(%arg0: i32, %arg1: memref<16x128xbf16, #tpu.memory_space<vmem>>, %arg2: memref<40x16xbf16, #tpu.memory_space<vmem>>, %arg3: memref<40x1xf32, #tpu.memory_space<vmem>>, %arg4: memref<8x8xbf16, #tpu.memory_space<vmem>>, %arg5: memref<8x1xf32, #tpu.memory_space<vmem>>, %arg6: memref<32x8xbf16, #tpu.memory_space<vmem>>, %arg7: memref<32x1xf32, #tpu.memory_space<vmem>>, %arg8: memref<2x128xbf16, #tpu.memory_space<vmem>>, %arg9: memref<32x128xbf16, #tpu.memory_space<vmem>>) attributes {dimension_semantics = [#tpu.dimension_semantics<parallel>], iteration_bounds = array<i64: 2>, scalar_prefetch = 0 : i64, scratch_operands = 0 : i64, tpu.core_type = #tpu.core_type<tc>, window_params = [{transform_indices = @transform_0, window_bounds = array<i64: 16, 128>}, {pipeline_mode = #tpu.pipeline_mode<synchronous>, transform_indices = @transform_1, window_bounds = array<i64: 40, 16>}, {pipeline_mode = #tpu.pipeline_mode<synchronous>, transform_indices = @transform_2, window_bounds = array<i64: 40, 1>}, {pipeline_mode = #tpu.pipeline_mode<synchronous>, transform_indices = @transform_3, window_bounds = array<i64: 8, 8>}, {pipeline_mode = #tpu.pipeline_mode<synchronous>, transform_indices = @transform_4, window_bounds = array<i64: 8, 1>}, {pipeline_mode = #tpu.pipeline_mode<synchronous>, transform_indices = @transform_5, window_bounds = array<i64: 32, 8>}, {pipeline_mode = #tpu.pipeline_mode<synchronous>, transform_indices = @transform_6, window_bounds = array<i64: 32, 1>}, {transform_indices = @transform_7, window_bounds = array<i64: 2, 128>}, {transform_indices = @transform_8, window_bounds = array<i64: 32, 128>}]} {
    %c0 = arith.constant 0 : index
    %c0_0 = arith.constant 0 : index
    %0 = vector.load %arg1[%c0, %c0_0] : memref<16x128xbf16, #tpu.memory_space<vmem>>, vector<16x128xbf16>
    %c0_1 = arith.constant 0 : index
    %c0_2 = arith.constant 0 : index
    %1 = vector.load %arg8[%c0_1, %c0_2] : memref<2x128xbf16, #tpu.memory_space<vmem>>, vector<2x128xbf16>
    %c0_3 = arith.constant 0 : index
    %c0_4 = arith.constant 0 : index
    %2 = vector.load %arg2[%c0_3, %c0_4] : memref<40x16xbf16, #tpu.memory_space<vmem>>, vector<40x16xbf16>
    %cst = arith.constant dense<0.000000e+00> : vector<40x128xf32>
    %3 = tpu.matmul %2, %0, %cst {dimension_numbers = #tpu.dot_dimension_numbers<[1], [0], [0], [1], [0, 0, 1, 1], [], []>} : vector<40x16xbf16>, vector<16x128xbf16>, vector<40x128xf32> -> vector<40x128xf32>
    %c0_5 = arith.constant 0 : index
    %c0_6 = arith.constant 0 : index
    %4 = vector.load %arg3[%c0_5, %c0_6] : memref<40x1xf32, #tpu.memory_space<vmem>>, vector<40x1xf32>
    %5 = vector.broadcast %4 : vector<40x1xf32> to vector<40x128xf32>
    %6 = arith.addf %3, %5 : vector<40x128xf32>
    %7 = vector.extract_strided_slice %6 {offsets = [8, 0], sizes = [32, 128], strides = [1, 1]} : vector<40x128xf32> to vector<32x128xf32>
    %8 = vector.extract_strided_slice %6 {offsets = [0, 0], sizes = [8, 128], strides = [1, 1]} : vector<40x128xf32> to vector<8x128xf32>
    %cst_7 = arith.constant 0.000000e+00 : f32
    %9 = vector.broadcast %cst_7 : f32 to vector<8x128xf32>
    %10 = arith.maximumf %8, %9 : vector<8x128xf32>
    %11 = arith.truncf %10 : vector<8x128xf32> to vector<8x128xbf16>
    %12 = vector.extract_strided_slice %1 {offsets = [0, 0], sizes = [1, 128], strides = [1, 1]} : vector<2x128xbf16> to vector<1x128xbf16>
    %13 = vector.broadcast %12 : vector<1x128xbf16> to vector<8x128xbf16>
    %14 = arith.mulf %11, %13 : vector<8x128xbf16>
    %c0_8 = arith.constant 0 : index
    %c0_9 = arith.constant 0 : index
    %15 = vector.load %arg4[%c0_8, %c0_9] : memref<8x8xbf16, #tpu.memory_space<vmem>>, vector<8x8xbf16>
    %cst_10 = arith.constant dense<0.000000e+00> : vector<8x128xf32>
    %16 = tpu.matmul %15, %14, %cst_10 {dimension_numbers = #tpu.dot_dimension_numbers<[1], [0], [0], [1], [0, 0, 1, 1], [], []>} : vector<8x8xbf16>, vector<8x128xbf16>, vector<8x128xf32> -> vector<8x128xf32>
    %c0_11 = arith.constant 0 : index
    %c0_12 = arith.constant 0 : index
    %17 = vector.load %arg5[%c0_11, %c0_12] : memref<8x1xf32, #tpu.memory_space<vmem>>, vector<8x1xf32>
    %18 = vector.broadcast %17 : vector<8x1xf32> to vector<8x128xf32>
    %19 = arith.addf %16, %18 : vector<8x128xf32>
    %cst_13 = arith.constant 0.000000e+00 : f32
    %20 = vector.broadcast %cst_13 : f32 to vector<8x128xf32>
    %21 = arith.maximumf %19, %20 : vector<8x128xf32>
    %22 = arith.truncf %21 : vector<8x128xf32> to vector<8x128xbf16>
    %23 = vector.extract_strided_slice %1 {offsets = [1, 0], sizes = [1, 128], strides = [1, 1]} : vector<2x128xbf16> to vector<1x128xbf16>
    %24 = vector.broadcast %23 : vector<1x128xbf16> to vector<8x128xbf16>
    %25 = arith.mulf %22, %24 : vector<8x128xbf16>
    %c0_14 = arith.constant 0 : index
    %c0_15 = arith.constant 0 : index
    %26 = vector.load %arg6[%c0_14, %c0_15] : memref<32x8xbf16, #tpu.memory_space<vmem>>, vector<32x8xbf16>
    %cst_16 = arith.constant dense<0.000000e+00> : vector<32x128xf32>
    %27 = tpu.matmul %26, %25, %cst_16 {dimension_numbers = #tpu.dot_dimension_numbers<[1], [0], [0], [1], [0, 0, 1, 1], [], []>} : vector<32x8xbf16>, vector<8x128xbf16>, vector<32x128xf32> -> vector<32x128xf32>
    %c0_17 = arith.constant 0 : index
    %c0_18 = arith.constant 0 : index
    %28 = vector.load %arg7[%c0_17, %c0_18] : memref<32x1xf32, #tpu.memory_space<vmem>>, vector<32x1xf32>
    %29 = vector.broadcast %28 : vector<32x1xf32> to vector<32x128xf32>
    %30 = arith.addf %27, %29 : vector<32x128xf32>
    %31 = arith.addf %30, %7 : vector<32x128xf32>
    %cst_19 = arith.constant 0.000000e+00 : f32
    %32 = vector.broadcast %cst_19 : f32 to vector<32x128xf32>
    %33 = arith.maximumf %31, %32 : vector<32x128xf32>
    %34 = arith.truncf %33 : vector<32x128xf32> to vector<32x128xbf16>
    %c0_20 = arith.constant 0 : index
    %c0_21 = arith.constant 0 : index
    %35 = vector.load %arg9[%c0_20, %c0_21] : memref<32x128xbf16, #tpu.memory_space<vmem>>, vector<32x128xbf16>
    tpu.vector_store %arg9[%c0_20, %c0_21], %34 {strides = array<i32>} : memref<32x128xbf16, #tpu.memory_space<vmem>>, vector<32x128xbf16>,
    return
  }
  func.func @transform_0(%arg0: i32) -> (i32, i32) {
    %c0_i32 = arith.constant 0 : i32
    %c0_i32_0 = arith.constant 0 : i32
    return %c0_i32, %arg0 : i32, i32
  }
  func.func @transform_1(%arg0: i32) -> (i32, i32) {
    %c0_i32 = arith.constant 0 : i32
    %c0_i32_0 = arith.constant 0 : i32
    %c0_i32_1 = arith.constant 0 : i32
    return %c0_i32, %c0_i32_0 : i32, i32
  }
  func.func @transform_2(%arg0: i32) -> (i32, i32) {
    %c0_i32 = arith.constant 0 : i32
    %c0_i32_0 = arith.constant 0 : i32
    %c0_i32_1 = arith.constant 0 : i32
    return %c0_i32, %c0_i32_0 : i32, i32
  }
  func.func @transform_3(%arg0: i32) -> (i32, i32) {
    %c0_i32 = arith.constant 0 : i32
    %c0_i32_0 = arith.constant 0 : i32
    %c0_i32_1 = arith.constant 0 : i32
    return %c0_i32, %c0_i32_0 : i32, i32
  }
  func.func @transform_4(%arg0: i32) -> (i32, i32) {
    %c0_i32 = arith.constant 0 : i32
    %c0_i32_0 = arith.constant 0 : i32
    %c0_i32_1 = arith.constant 0 : i32
    return %c0_i32, %c0_i32_0 : i32, i32
  }
  func.func @transform_5(%arg0: i32) -> (i32, i32) {
    %c0_i32 = arith.constant 0 : i32
    %c0_i32_0 = arith.constant 0 : i32
    %c0_i32_1 = arith.constant 0 : i32
    return %c0_i32, %c0_i32_0 : i32, i32
  }
  func.func @transform_6(%arg0: i32) -> (i32, i32) {
    %c0_i32 = arith.constant 0 : i32
    %c0_i32_0 = arith.constant 0 : i32
    %c0_i32_1 = arith.constant 0 : i32
    return %c0_i32, %c0_i32_0 : i32, i32
  }
  func.func @transform_7(%arg0: i32) -> (i32, i32) {
    %c0_i32 = arith.constant 0 : i32
    %c0_i32_0 = arith.constant 0 : i32
    return %c0_i32, %arg0 : i32, i32
  }
  func.func @transform_8(%arg0: i32) -> (i32, i32) {
    %c0_i32 = arith.constant 0 : i32
    %c0_i32_0 = arith.constant 0 : i32
    return %c0_i32, %arg0 : i32, i32
  }
}

</mosaic_0001>

<bundles_post_ra>
// kernel: bottleneck_pallas.1
= control target key start
LH: loop header
LB: loop body
LE: loop exit
PB: predicated region body
PF: predicated region fallthrough
CT: control target
= control target key end

     0   :  { %s998_s27 = smov 0   ;;  %s1000_s28 = smov 0   ;;  %s1118_s0 = inlined_call_operand.vmem [shape: bf16[16,256], index: 0, kind: input, shape index: {}]   ;;  %s1119_s1 = inlined_call_operand.vmem [shape: bf16[40,16], index: 1, kind: input, shape index: {}]   ;;  %s1120_s2 = inlined_call_operand.vmem [shape: f32[40,1], index: 2, kind: input, shape index: {}]   ;;  %s1121_s3 = inlined_call_operand.vmem [shape: bf16[8,8], index: 3, kind: input, shape index: {}]   ;;  %s1122_s4 = inlined_call_operand.vmem [shape: f32[8,1], index: 4, kind: input, shape index: {}]   ;;  %s1123_s5 = inlined_call_operand.vmem [shape: bf16[32,8], index: 5, kind: input, shape index: {}]   ;;  %s1124_s6 = inlined_call_operand.vmem [shape: f32[32,1], index: 6, kind: input, shape index: {}]   ;;  %s1125_s7 = inlined_call_operand.vmem [shape: bf16[2,256], index: 7, kind: input, shape index: {}]   ;;  %s1126_s8 = inlined_call_operand.vmem [shape: bf16[32,256], index: 8, kind: output, shape index: {}]  }
   0x1   :  { %s1002_s29 = smov 0  }
   0x2 LB: > { %s1011_s30 = sadd.s32 4294967295, %s948_s29   ;;  %s1013_s9 = sadd.s32 1, %s948_s29   ;;  %s948_s29 = sphi %s1002_s29, %s1130_s29   ;;  %s944_s28 = sphi %s1000_s28, %s1129_s28   ;;  %s940_s27 = sphi %s998_s27, %s1128_s27  }
   0x3   : > { %s22_s10 = ssub.s32 %s948_s29, %s1013_s9  ;;  %s25_s11 = sadd.s32 1, %s944_s28 }
   0x4   : > { %p23_p0 = scmp.eq.s32.totalorder %s22_s10, 0  ;;  %p32_p1 = scmp.ne.s32.totalorder %s944_s28, %s940_s27 }
   0x5   : > { %p33_p2 = scmp.eq.s32.totalorder %s948_s29, 0  ;;  %p214_p3 = scmp.eq.s32.totalorder %s1011_s30, 1 }
   0x6   : > { %s1021_s12 = scalar_select %p23_p0, %s944_s28, %s25_s11  }
   0x7   : > { %p34_p4 = por %p33_p2, %p32_p1  ;;  %p1023_p5 = por %p214_p3, %p32_p1 }
   0x8   : > { %p814_p6 = scmp.ge.s32.totalorder %s948_s29, 2 }
   0xa   : > { %254 = sbr.rel (%p814_p6) target bundleno = 20 (0x14), region = 40 }
   0xf   : > { %257 = sbr.rel (!%p34_p4) target bundleno = 20 (0x14), region = 44  ;;  %s259_s14 = sand.u32 (%p34_p4), 1, %s944_s28  }
  0x10   : > { %s816_s15 = sshll.u32 (%p34_p4), %s948_s29, 2  ;;  %s815_s16 = sshll.u32 (%p34_p4), %s259_s14, 3 }
  0x11   : > { %s263_s19 = scalar_lea.vmem (%p34_p4), %s1118_s0, %s816_s15  ;;  %s261_s20 = scalar_lea.vmem (%p34_p4), [#allocation2], %s815_s16 }
  0x12   : > { %v280_v0 = vld [vmem:[%s263_s19] sm:$0xf] (%p34_p4)  ;;  %v282_v1 = vld [vmem:[%s263_s19 + $0x8] sm:$0xf] (%p34_p4) }
  0x13   : > { %281 = vst [vmem:[%s261_s20] sm:$0xf] (%p34_p4), %v280_v0  ;;  %283 = vst [vmem:[%s261_s20 + $0x4] sm:$0xf] (%p34_p4), %v282_v1 }
  0x14 PF: > { %p817_p7 = scmp.ge.s32.totalorder %s948_s29, 1  ;;  %p316_p8 = scmp.lt.s32.totalorder %s948_s29, 3 }
  0x16   : > { %p317_p9 = pnand %p817_p7, %p316_p8 }
  0x17   : > { %s323_s21 = sand.u32 (!%p317_p9), 1, %s940_s27   ;;  %p358_p10 = scmp.lt.s32.totalorder (!%p317_p9), %s1011_s30, 1 }
  0x18   : > { %320 = sbr.rel (%p317_p9) target bundleno = 662 (0x296), region = 89  ;;  %s818_s22 = sshll.u32 (!%p317_p9), %s323_s21, 3 }
  0x19   : > { %s325_s23 = scalar_lea.vmem (!%p317_p9), [#allocation2], %s818_s22  ;;  %s819_s14 = sshll.u32 (!%p317_p9), %s323_s21, 4 }
  0x1a   : > { %s357_s15 = scalar_lea.vmem (!%p317_p9), [#allocation3], %s819_s14 }
  0x1d   : > { %v950_v2 = vmov 0.0   ;;  %vm951_vm0 = vmmov 0   ;;  %v920_v3 = vld [vmem:[%s325_s23] sm:$0xff]   ;;  %v952_v5 = vmov 0   ;;  %vm419_vm1 = vcmask 130048   ;;  %v373_v9 = vld [vmem:[%s1120_s2 + $0x18] sm:$0xff] }
  0x1e   : > { %864 = vmatprep.subr.bf16.mxu0 %v950_v2  ;;  %866 = vmatprep.mubr.msk.bf16.mxu0 %vm951_vm0, %v950_v2  ;;  %v921_v4 = vld [vmem:[%s1119_s1] sm:$0xff]   ;;  %v371_v8 = vld [vmem:[%s1120_s2 + $0x8] sm:$0xff]  ;;  %v566_v12 = vld [vmem:[%s1124_s6 + $0x10] sm:$0xff]  ;;  %s359_s25 = scalar_select %p358_p10, %s1011_s30, 1  ;;  %v490_v13 = vlaneseq  ;;  %vm506_vm2 = vcmask 1043456   ;;  %vm502_vm3 = vcmask 64512  }
  0x1f   : > { %878 = vmatprep.subr.bf16.mxu1 %v950_v2  ;;  %880 = vmatprep.mubr.msk.bf16.mxu1 %vm951_vm0, %v950_v2  ;;  %v370_v6 = vld [vmem:[%s1120_s2] sm:$0xff]  ;;  %v922_v10 = vld [vmem:[%s1119_s1 + $0x8] sm:$0xff]   ;;  %v923_v34 = vld [vmem:[%s1119_s1 + $0x10] ss:$0 sps:$4 sm:$0xff]   ;;  %s837_s27 = sshll.u32 (%p1023_p5), %s1011_s30, 2 }
  0x20   : > { %918 = vset.pattern.permute.xlu0 %v952_v5  ;;  %919 = vset.pattern.permute.xlu1 %v952_v5  ;;  %v496_v7 = vld [vmem:[%s1122_s4] sm:$0xff]  ;;  %s360_s10 = scalar_lea.vmem %s1125_s7, %s359_s25  ;;  %v491_v14 = vshrl.u32 %v490_v13, 7  ;;  %v372_v36 = vld [vmem:[%s1120_s2 + $0x10] sm:$0xff]  ;;  %v565_v38 = vld [vmem:[%s1124_s6 + $0x8] sm:$0xff]  ;;  %s692_s17 = scalar_lea.vmem (%p1023_p5), %s1126_s8, %s837_s27 }
  0x21   : > { %865 = vmatpush3.bf16.msra.mxu0 %v920_v3  ;;  %377 = vperm.xlu0 %918, %v370_v6   ;;  %v564_v11 = vld [vmem:[%s1124_s6] sm:$0xff]  ;;  %v567_v39 = vld [vmem:[%s1124_s6 + $0x18] sm:$0xff]  ;;  %v925_v53 = vld [vmem:[%s1123_s5 + $0x8] sm:$0xff]  }
  0x22   : > { %382 = vperm.xlu1 %919, %v371_v8   ;;  %v364_v15 = vld [vmem:[%s360_s10] sm:$0x1]  ;;  %v492_v17 = vsub.s32 0, %v491_v14 }
  0x23   : > { %v488_v16 = vpack.i.b16 %v364_v15, %v364_v15  ;;  %v495_v31 = vld [vmem:[%s1121_s3] sm:$0xf]  ;;  %v552_v40 = vshrl.u32 %v364_v15, 16 }
  0x24   : > { %867 = vmatmul.mubr.msk.bf16.vlgmr.msra.gmra.mxu0 %vm419_vm1, %v921_v4  ;;  %v924_v35 = vld [vmem:[%s1123_s5] sm:$0xff]  }
  0x25   : > { %870 = vmatprep.mubr.msk.bf16.mxu0 %vm951_vm0, %v950_v2  ;;  %499 = vperm.xlu0 %918, %v496_v7   ;;  %v493_v23 = vrot.slane %v488_v16, %v492_v17  ;;  %v374_v37 = vld [vmem:[%s1120_s2 + $0x20] sm:$0xff]  ;;  %v553_v41 = vpack.i.b16 %v552_v40, %v552_v40 }
  0x26   : > { %387 = vperm.xlu1 %919, %v372_v36  }
  0x27   : > { %v558_v47 = vrot.slane %v553_v41, %v492_v17 }
  0x29   : > { %392 = vperm.xlu0 %918, %v373_v9  }
  0x2a   : > { %397 = vperm.xlu1 %919, %v374_v37  }
  0x2c   : > { %871 = vmatmul.mubr.msk.bf16.gmra.mxu0 %vm419_vm1, %v922_v10 }
  0x2d   : > { %570 = vperm.xlu0 %918, %v564_v11   ;;  %874 = vmatprep.mubr.msk.bf16.mxu0 %vm951_vm0, %v950_v2 }
  0x2e   : > { %575 = vperm.xlu1 %919, %v565_v38  }
  0x31   : > { %580 = vperm.xlu0 %918, %v566_v12  }
  0x32   : > { %585 = vperm.xlu1 %919, %v567_v39  }
  0x34   : > { %875 = vmatmul.mubr.msk.bf16.gmra.mxu0 %vm419_vm1, %v923_v34 }
  0x9c   : > { %v378_v18 = vpop.permute.xlu0 %377 }
  0x9d   : > { %v383_v58 = vpop.permute.xlu1 %382 }
  0xa0   : > { %v500_v42 = vpop.permute.xlu0 %499 }
  0xa1   : > { %v388_v59 = vpop.permute.xlu1 %387 }
  0xa4   : > { %v393_v60 = vpop.permute.xlu0 %392 }
  0xa5   : > { %v398_v61 = vpop.permute.xlu1 %397 }
  0xa8   : > { %v571_v62 = vpop.permute.xlu0 %570 }
  0xa9   : > { %v576_v63 = vpop.permute.xlu1 %575 }
  0xac   : > { %v581_v0 = vpop.permute.xlu0 %580 }
  0xad   : > { %v586_v6 = vpop.permute.xlu1 %585 }
  0xe4   : > { %v463_v19 = vpop.f32.mrf.mxu0 }
  0xe5   : > { %v464_v20 = vadd.f32 %v463_v19, %v378_v18 }
  0xe6   : > { %v868_v21 = vpop.f32.mrf.mxu0 }
  0xe7   : > { %v485_v22 = vmax.f32 %v464_v20, 0.0 }
  0xe8   : > { %v466_v24 = vpop.f32.mrf.mxu0 }
  0xe9   : > { %v486_v25 = vpack.c.bf16 %v485_v22, %v485_v22  ;;  %v467_v8 = vadd.f32 %v466_v24, %v383_v58 }
  0xea   : > { %v869_v26 = vpop.f32.mrf.mxu0 }
  0xeb   : > { %v494_v27 = vmul.bf16 %v493_v23, %v486_v25 }
  0xec   : > { %v471_v28 = vpop.f32.mrf.mxu0 }
  0xed   : > { %v508_v29 = vsel %vm506_vm2, %v494_v27, 0  ;;  %v472_v13 = vadd.f32 %v471_v28, %v388_v59 }
  0xee   : > { %v872_v30 = vpop.f32.mrf.mxu0  ;;  %879 = vmatpush3.bf16.msra.mxu1 %v508_v29 }
  0xf0   : > { %v474_v32 = vpop.f32.mrf.mxu0 }
  0xf1   : > { %881 = vmatmul.mubr.msk.bf16.vlgmr.msra.gmra.mxu1 %vm502_vm3, %v495_v31  ;;  %v475_v4 = vadd.f32 %v474_v32, %v393_v60 }
  0xf2   : > { %v873_v33 = vpop.f32.mrf.mxu0  ;;  %886 = vmatprep.mubr.msk.bf16.mxu1 %vm502_vm3, %v924_v35 }
  0xf4   : > { %v479_v54 = vpop.f32.mrf.mxu0 }
  0xf5   : > { %v480_v9 = vadd.f32 %v479_v54, %v398_v61 }
  0xf6   : > { %v876_v55 = vpop.f32.mrf.mxu0 }
  0xf8   : > { %v482_v56 = vpop.f32.mrf.mxu0 }
  0xfa   : > { %v877_v57 = vpop.f32.mrf.mxu0 }
 0x1b1   : > { %v544_v43 = vpop.f32.mrf.mxu1 }
 0x1b2   : > { %v545_v44 = vadd.f32 %v544_v43, %v500_v42 }
 0x1b3   : > { %v882_v45 = vpop.f32.mrf.mxu1 }
 0x1b4   : > { %v550_v46 = vmax.f32 %v545_v44, 0.0 }
 0x1b5   : > { %v547_v48 = vpop.f32.mrf.mxu1 }
 0x1b6   : > { %v551_v49 = vpack.c.bf16 %v550_v46, %v550_v46 }
 0x1b7   : > { %v883_v50 = vpop.f32.mrf.mxu1 }
 0x1b8   : > { %v559_v51 = vmul.bf16 %v558_v47, %v551_v49 }
 0x1ba   : > { %890 = vmatprep.subr.msk.bf16.mxu1 %vm506_vm2, %v559_v51  ;;  %v605_v52 = vsel %vm506_vm2, %v559_v51, 0 }
 0x1bb   : > { %885 = vmatpush3.bf16.msra.mxu1 %v605_v52 }
 0x1be   : > { %887 = vmatmul.mubr.msk.bf16.vlgmr.msra.gmra.mxu1 %vm502_vm3, %v925_v53 }
 0x27e   : > { %v888_v1 = vpop.f32.mrf.mxu1 }
 0x27f   : > { %v650_v2 = vadd.f32 %v888_v1, %v581_v0 }
 0x280   : > { %v641_v3 = vpop.f32.mrf.mxu1 }
 0x281   : > { %v642_v5 = vadd.f32 %v641_v3, %v571_v62  ;;  %v658_v10 = vadd.f32 %v650_v2, %v475_v4 }
 0x282   : > { %v889_v7 = vpop.f32.mrf.mxu1 }
 0x283   : > { %v653_v11 = vadd.f32 %v889_v7, %v586_v6  ;;  %v656_v14 = vadd.f32 %v642_v5, %v467_v8  ;;  %v662_v17 = vmax.f32 %v658_v10, 0.0 }
 0x284   : > { %v644_v12 = vpop.f32.mrf.mxu1 }
 0x285   : > { %v659_v15 = vadd.f32 %v653_v11, %v480_v9  ;;  %v645_v16 = vadd.f32 %v644_v12, %v576_v63  ;;  %v660_v20 = vmax.f32 %v656_v14, 0.0 }
 0x287   : > { %v663_v18 = vmax.f32 %v659_v15, 0.0  ;;  %v657_v19 = vadd.f32 %v645_v16, %v472_v13 }
 0x289   : > { %v852_v21 = vpack.c.bf16 %v663_v18, %v662_v17  ;;  %v661_v22 = vmax.f32 %v657_v19, 0.0  ;;  %690 = sbr.rel (!%p1023_p5) target bundleno = 662 (0x296), region = 97 }
 0x28b   : > { %854 = vst [vmem:[%s357_s15 + $0x8] sm:$0xff] %v852_v21   ;;  %v847_v23 = vpack.c.bf16 %v661_v22, %v660_v20 }
 0x28d   : > { %848 = vst [vmem:[%s357_s15] sm:$0xff] %v847_v23  }
 0x292   : > { %v713_v26 = vld [vmem:[%s357_s15 + $0x8] sm:$0xf]  ;;  %v715_v27 = vld [vmem:[%s357_s15 + $0xc] sm:$0xf] }
 0x293   : > { %714 = vst [vmem:[%s692_s17 + $0x10] sm:$0xf] %v713_v26  ;;  %716 = vst [vmem:[%s692_s17 + $0x18] sm:$0xf] %v715_v27 }
 0x294   : > { %v709_v24 = vld [vmem:[%s357_s15] sm:$0xf]  ;;  %v711_v25 = vld [vmem:[%s357_s15 + $0x4] sm:$0xf] }
 0x295   : > { %710 = vst [vmem:[%s692_s17] sm:$0xf] %v709_v24  ;;  %712 = vst [vmem:[%s692_s17 + $0x8] sm:$0xf] %v711_v25 }
 0x296 PF: > { %p15_p11 = scmp.ge.s32.totalorder %s1013_s9, 4   ;;  %s1128_s27 = smov %s944_s28 }
 0x297   : > { %s1129_s28 = smov %s1021_s12  ;;  %s1130_s29 = smov %s1013_s9 }
 0x298   :  { %17 = sbr.rel (!%p15_p11) target bundleno = 2 (0x2), region = 172 }

</bundles_post_ra>
